<compile_context>
chip_gen: v7x
topology: tpu7x:2x2x1
jax: 0.10.0
libtpu: 0.0.40
codegen_flags: <defaults>
</compile_context>

<pallas_src>
import jax
import jax.numpy as jnp
from jax import lax
from jax.experimental import pallas as pl
from jax.experimental.pallas import tpu as pltpu


def _round_up(x, m):
    return (x + m - 1) // m * m


def _pick_tile_h(H, W, cout_p, max_acc_bytes=64 * 1024):
    """Largest divisor of H whose f32 accumulator tile (TH*W, Cout_p) stays small."""
    best = 1
    for th in range(1, H + 1):
        if H % th == 0 and th * W * cout_p * 4 <= max_acc_bytes:
            best = th
    return best


# ----------------------------------------------------------------------------
# Pallas kernel: fused (loc+cls) 3x3 'same' conv on one (batch, row-tile).
# ----------------------------------------------------------------------------
def _conv3x3_fused_kernel(x_ref, w_ref, b_ref, o_ref):
    # x_ref: (1, H+2, W+2, Cin)   bf16, spatially pre-padded, resident per batch
    # w_ref: (3, 3*Cin, Cout_p)   bf16, ky-major; K index = kx*Cin + ci
    # b_ref: (1, Cout_p)          f32
    # o_ref: (1, TH, W, Cout_p)   f32, lane-dense (Cout_p % 128 == 0)
    TH = o_ref.shape[1]
    W = o_ref.shape[2]
    Cout = o_ref.shape[3]
    Cin = x_ref.shape[3]

    t = pl.program_id(1)
    row0 = pl.multiple_of(t * TH, TH)

    acc = jnp.zeros((TH * W, Cout), jnp.float32)
    for ky in range(3):
        rows = x_ref[0, pl.ds(row0 + ky, TH), :, :]            # (TH, W+2, Cin)
        # Fold the three kx taps into the contraction dim: K = 3*Cin.
        slab = jnp.concatenate(
            [rows[:, 0:W, :], rows[:, 1:W + 1, :], rows[:, 2:W + 2, :]],
            axis=-1)                                           # (TH, W, 3*Cin)
        acc = acc + jnp.dot(slab.reshape(TH * W, 3 * Cin), w_ref[ky],
                            preferred_element_type=jnp.float32)
    acc = acc + b_ref[0, :]
    o_ref[...] = acc.reshape(1, TH, W, Cout).astype(o_ref.dtype)


def conv3x3_fused(x_nhwc_bf16, w_packed, b_packed):
    """Fused 3x3 'same' conv (stride 1) of one feature map against packed weights.

    Args:
      x_nhwc_bf16: [N, H, W, Cin] bf16
      w_packed:    [3, 3*Cin, Cout_p] bf16   (ky-major, K index = kx*Cin + ci)
      b_packed:    [1, Cout_p] f32
    Returns:
      [N, H, W, Cout_p] f32
    """
    N, H, W, Cin = x_nhwc_bf16.shape
    Cout_p = w_packed.shape[-1]
    tile_h = _pick_tile_h(H, W, Cout_p)
    n_ht = H // tile_h

    # Spatial zero padding done once per feature map (glue, not the hot path).
    x_pad = jnp.pad(x_nhwc_bf16, ((0, 0), (1, 1), (1, 1), (0, 0)))
    Hp, Wp = H + 2, W + 2

    return pl.pallas_call(
        _conv3x3_fused_kernel,
        out_shape=jax.ShapeDtypeStruct((N, H, W, Cout_p), jnp.float32),
        grid_spec=pltpu.PrefetchScalarGridSpec(
            num_scalar_prefetch=0,
            grid=(N, n_ht),
            in_specs=[
                # Input block index ignores the row-tile axis -> DMA'd once per
                # batch and kept resident across the inner H tiles.
                pl.BlockSpec((1, Hp, Wp, Cin), lambda n, t: (n, 0, 0, 0)),
                pl.BlockSpec((3, 3 * Cin, Cout_p), lambda n, t: (0, 0, 0)),
                pl.BlockSpec((1, Cout_p), lambda n, t: (0, 0)),
            ],
            out_specs=pl.BlockSpec((1, tile_h, W, Cout_p),
                                   lambda n, t: (n, t, 0, 0)),
        ),
        compiler_params=pltpu.CompilerParams(
            dimension_semantics=("parallel", "parallel")),
    )(x_pad, w_packed, b_packed)


# ----------------------------------------------------------------------------
# MultiBoxLayer in JAX/Pallas.
# ----------------------------------------------------------------------------
class MultiBoxLayerPallas:
    def __init__(self, num_classes, num_anchors, in_planes, key):
        self.num_classes = num_classes
        self.num_anchors = num_anchors
        self.in_planes = in_planes
        self.raw_params = []     # f32 per-head weights, for the reference check
        self.packed_params = []  # fused bf16 weights / f32 bias for the kernel
        for i in range(len(in_planes)):
            cin = in_planes[i]
            a = num_anchors[i]
            loc_cout = a * 4
            cls_cout = a * (num_classes + 1)
            key, k1, k2, k3, k4 = jax.random.split(key, 5)
            # deterministic synthetic init; shapes match nn.Conv2d(cin, cout, 3, padding=1)
            w_loc = jax.random.normal(k1, (9, cin, loc_cout), jnp.float32) * 0.05
            b_loc = jax.random.normal(k2, (loc_cout,), jnp.float32) * 0.05
            w_cls = jax.random.normal(k3, (9, cin, cls_cout), jnp.float32) * 0.05
            b_cls = jax.random.normal(k4, (cls_cout,), jnp.float32) * 0.05
            self.raw_params.append((w_loc, b_loc, w_cls, b_cls))

            # --- fuse loc+cls along Cout, pad to a multiple of 128, pack for the kernel
            cout = loc_cout + cls_cout
            cout_p = _round_up(cout, 128)
            w_f = jnp.concatenate([w_loc, w_cls], axis=-1)          # (9, Cin, cout)
            w_f = jnp.pad(w_f, ((0, 0), (0, 0), (0, cout_p - cout)))
            # tap index = ky*3 + kx  ->  (3[ky], 3*Cin [kx*Cin + ci], Cout_p)
            w_f = w_f.reshape(3, 3, cin, cout_p).reshape(3, 3 * cin, cout_p)
            w_f = w_f.astype(jnp.bfloat16)
            b_f = jnp.concatenate([b_loc, b_cls])
            b_f = jnp.pad(b_f, (0, cout_p - cout)).reshape(1, cout_p)
            self.packed_params.append((w_f, b_f, loc_cout, cls_cout))

    def __call__(self, fms_nchw):
        """fms_nchw: list of [N, Cin_i, H_i, W_i] float32 tensors (PyTorch layout)."""
        loc_preds, cls_preds = [], []
        for (w_f, b_f, loc_cout, cls_cout), fm in zip(self.packed_params, fms_nchw):
            N = fm.shape[0]
            x = jnp.transpose(fm, (0, 2, 3, 1)).astype(jnp.bfloat16)  # NCHW -> NHWC
            y = conv3x3_fused(x, w_f, b_f)                            # (N,H,W,Cout_p) f32
            loc = y[..., :loc_cout]
            cls = y[..., loc_cout:loc_cout + cls_cout]
            # NHWC output == permute(0,2,3,1) of the NCHW conv output, so the
            # reshape matches PyTorch's .view(N, -1, 4) / .view(N, -1, C+1).
            loc_preds.append(loc.reshape(N, -1, 4))
            cls_preds.append(cls.reshape(N, -1, self.num_classes + 1))
        return (jnp.concatenate(loc_preds, axis=1),
                jnp.concatenate(cls_preds, axis=1))


# ----------------------------------------------------------------------------
# Pure-JAX reference (lax conv) for correctness check.
# ----------------------------------------------------------------------------
def _ref_conv3x3(x_nhwc, w, b, dtype):
    # w: [9, Cin, Cout] -> HWIO [3, 3, Cin, Cout]
    w_hwio = w.reshape(3, 3, w.shape[1], w.shape[2]).astype(dtype)
    y = lax.conv_general_dilated(
        x_nhwc.astype(dtype), w_hwio, window_strides=(1, 1), padding="SAME",
        dimension_numbers=("NHWC", "HWIO", "NHWC"),
        preferred_element_type=jnp.float32)
    return y + b


def _ref_forward(layer, fms_nchw, dtype=jnp.float32):
    loc_preds, cls_preds = [], []
    for (w_loc, b_loc, w_cls, b_cls), fm in zip(layer.raw_params, fms_nchw):
        N = fm.shape[0]
        x = jnp.transpose(fm, (0, 2, 3, 1))
        loc = _ref_conv3x3(x, w_loc, b_loc, dtype)
        cls = _ref_conv3x3(x, w_cls, b_cls, dtype)
        loc_preds.append(loc.reshape(N, -1, 4))
        cls_preds.append(cls.reshape(N, -1, layer.num_classes + 1))
    return (jnp.concatenate(loc_preds, axis=1),
            jnp.concatenate(cls_preds, axis=1))


if __name__ == "__main__":
    key = jax.random.PRNGKey(0)
    num_classes = 20
    num_anchors = [4, 6]
    in_planes = [4, 8]

    k_params, k_fm0, k_fm1 = jax.random.split(key, 3)
    layer = MultiBoxLayerPallas(num_classes, num_anchors, in_planes, k_params)

    # Two feature maps (PyTorch NCHW layout), small shapes.
    fm0 = jax.random.normal(k_fm0, (2, 4, 16, 16), jnp.float32)
    fm1 = jax.random.normal(k_fm1, (2, 8, 8, 8), jnp.float32)
    fms = [fm0, fm1]

    loc_preds, cls_preds = layer(fms)
    loc_preds = jax.block_until_ready(loc_preds)
    cls_preds = jax.block_until_ready(cls_preds)

    # Shape checks: [N, H*W*A (summed), 4] / [N, ..., num_classes+1]
    n_boxes = 16 * 16 * 4 + 8 * 8 * 6
    assert loc_preds.shape == (2, n_boxes, 4), loc_preds.shape
    assert cls_preds.shape == (2, n_boxes, num_classes + 1), cls_preds.shape

    # Numerical check vs. a bf16-matched lax-conv reference (same bf16 matmul
    # inputs, f32 accumulation) -> should agree tightly.
    ref_loc_b, ref_cls_b = _ref_forward(layer, fms, dtype=jnp.bfloat16)
    assert jnp.allclose(loc_preds, ref_loc_b, atol=1e-3, rtol=1e-3)
    assert jnp.allclose(cls_preds, ref_cls_b, atol=1e-3, rtol=1e-3)

    # Sanity check vs. full-f32 reference (loose tolerance: bf16 input rounding).
    ref_loc, ref_cls = _ref_forward(layer, fms, dtype=jnp.float32)
    assert jnp.allclose(loc_preds, ref_loc, atol=5e-2, rtol=5e-2)
    assert jnp.allclose(cls_preds, ref_cls, atol=5e-2, rtol=5e-2)

    print("KERNEL_OK")
</pallas_src>

<mosaic_0001>
module attributes {stable_mosaic.version = 11 : i64} {
  func.func @_conv3x3_fused_kernel(%arg0: i32, %arg1: i32, %arg2: memref<1x18x18x4xbf16, #tpu.memory_space<vmem>>, %arg3: memref<3x12x128xbf16, #tpu.memory_space<vmem>>, %arg4: memref<1x128xf32, #tpu.memory_space<vmem>>, %arg5: memref<1x8x16x128xf32, #tpu.memory_space<vmem>>) attributes {dimension_semantics = [#tpu.dimension_semantics<parallel>, #tpu.dimension_semantics<parallel>], iteration_bounds = array<i64: 2, 2>, scalar_prefetch = 0 : i64, scratch_operands = 0 : i64, tpu.core_type = #tpu.core_type<tc>, window_params = [{transform_indices = @transform_0, window_bounds = array<i64: 1, 18, 18, 4>}, {pipeline_mode = #tpu.pipeline_mode<synchronous>, transform_indices = @transform_1, window_bounds = array<i64: 3, 12, 128>}, {pipeline_mode = #tpu.pipeline_mode<synchronous>, transform_indices = @transform_2, window_bounds = array<i64: 1, 128>}, {transform_indices = @transform_3, window_bounds = array<i64: 1, 8, 16, 128>}]} {
    %c8_i32 = arith.constant 8 : i32
    %0 = arith.muli %arg1, %c8_i32 : i32
    %1 = tpu.assume_multiple %0, 8 : i32
    %cst = arith.constant 0.000000e+00 : f32
    %2 = vector.broadcast %cst : f32 to vector<128x128xf32>
    %c0_i32 = arith.constant 0 : i32
    %3 = arith.addi %1, %c0_i32 : i32
    %c0 = arith.constant 0 : index
    %4 = arith.index_cast %3 : i32 to index
    %c0_0 = arith.constant 0 : index
    %c0_1 = arith.constant 0 : index
    %5 = vector.load %arg2[%c0, %4, %c0_0, %c0_1] : memref<1x18x18x4xbf16, #tpu.memory_space<vmem>>, vector<1x8x18x4xbf16>
    %6 = vector.shape_cast %5 : vector<1x8x18x4xbf16> to vector<8x18x4xbf16>
    %7 = vector.extract_strided_slice %6 {offsets = [0, 0, 0], sizes = [8, 16, 4], strides = [1, 1, 1]} : vector<8x18x4xbf16> to vector<8x16x4xbf16>
    %8 = vector.extract_strided_slice %6 {offsets = [0, 1, 0], sizes = [8, 16, 4], strides = [1, 1, 1]} : vector<8x18x4xbf16> to vector<8x16x4xbf16>
    %9 = vector.extract_strided_slice %6 {offsets = [0, 2, 0], sizes = [8, 16, 4], strides = [1, 1, 1]} : vector<8x18x4xbf16> to vector<8x16x4xbf16>
    %10 = tpu.concatenate %7, %8, %9 in 2 : vector<8x16x4xbf16>, vector<8x16x4xbf16>, vector<8x16x4xbf16> -> vector<8x16x12xbf16>
    %11 = vector.shape_cast %10 : vector<8x16x12xbf16> to vector<128x12xbf16>
    %c0_2 = arith.constant 0 : index
    %c0_3 = arith.constant 0 : index
    %c0_4 = arith.constant 0 : index
    %12 = vector.load %arg3[%c0_2, %c0_3, %c0_4] : memref<3x12x128xbf16, #tpu.memory_space<vmem>>, vector<1x12x128xbf16>
    %13 = vector.shape_cast %12 : vector<1x12x128xbf16> to vector<12x128xbf16>
    %cst_5 = arith.constant dense<0.000000e+00> : vector<128x128xf32>
    %14 = tpu.matmul %11, %13, %cst_5 {dimension_numbers = #tpu.dot_dimension_numbers<[1], [0], [0], [1], [0, 0, 1, 1], [], []>} : vector<128x12xbf16>, vector<12x128xbf16>, vector<128x128xf32> -> vector<128x128xf32>
    %15 = arith.addf %2, %14 : vector<128x128xf32>
    %c1_i32 = arith.constant 1 : i32
    %16 = arith.addi %1, %c1_i32 : i32
    %c0_6 = arith.constant 0 : index
    %17 = arith.index_cast %16 : i32 to index
    %c0_7 = arith.constant 0 : index
    %c0_8 = arith.constant 0 : index
    %18 = vector.load %arg2[%c0_6, %17, %c0_7, %c0_8] : memref<1x18x18x4xbf16, #tpu.memory_space<vmem>>, vector<1x8x18x4xbf16>
    %19 = vector.shape_cast %18 : vector<1x8x18x4xbf16> to vector<8x18x4xbf16>
    %20 = vector.extract_strided_slice %19 {offsets = [0, 0, 0], sizes = [8, 16, 4], strides = [1, 1, 1]} : vector<8x18x4xbf16> to vector<8x16x4xbf16>
    %21 = vector.extract_strided_slice %19 {offsets = [0, 1, 0], sizes = [8, 16, 4], strides = [1, 1, 1]} : vector<8x18x4xbf16> to vector<8x16x4xbf16>
    %22 = vector.extract_strided_slice %19 {offsets = [0, 2, 0], sizes = [8, 16, 4], strides = [1, 1, 1]} : vector<8x18x4xbf16> to vector<8x16x4xbf16>
    %23 = tpu.concatenate %20, %21, %22 in 2 : vector<8x16x4xbf16>, vector<8x16x4xbf16>, vector<8x16x4xbf16> -> vector<8x16x12xbf16>
    %24 = vector.shape_cast %23 : vector<8x16x12xbf16> to vector<128x12xbf16>
    %c1 = arith.constant 1 : index
    %c0_9 = arith.constant 0 : index
    %c0_10 = arith.constant 0 : index
    %25 = vector.load %arg3[%c1, %c0_9, %c0_10] : memref<3x12x128xbf16, #tpu.memory_space<vmem>>, vector<1x12x128xbf16>
    %26 = vector.shape_cast %25 : vector<1x12x128xbf16> to vector<12x128xbf16>
    %cst_11 = arith.constant dense<0.000000e+00> : vector<128x128xf32>
    %27 = tpu.matmul %24, %26, %cst_11 {dimension_numbers = #tpu.dot_dimension_numbers<[1], [0], [0], [1], [0, 0, 1, 1], [], []>} : vector<128x12xbf16>, vector<12x128xbf16>, vector<128x128xf32> -> vector<128x128xf32>
    %28 = arith.addf %15, %27 : vector<128x128xf32>
    %c2_i32 = arith.constant 2 : i32
    %29 = arith.addi %1, %c2_i32 : i32
    %c0_12 = arith.constant 0 : index
    %30 = arith.index_cast %29 : i32 to index
    %c0_13 = arith.constant 0 : index
    %c0_14 = arith.constant 0 : index
    %31 = vector.load %arg2[%c0_12, %30, %c0_13, %c0_14] : memref<1x18x18x4xbf16, #tpu.memory_space<vmem>>, vector<1x8x18x4xbf16>
    %32 = vector.shape_cast %31 : vector<1x8x18x4xbf16> to vector<8x18x4xbf16>
    %33 = vector.extract_strided_slice %32 {offsets = [0, 0, 0], sizes = [8, 16, 4], strides = [1, 1, 1]} : vector<8x18x4xbf16> to vector<8x16x4xbf16>
    %34 = vector.extract_strided_slice %32 {offsets = [0, 1, 0], sizes = [8, 16, 4], strides = [1, 1, 1]} : vector<8x18x4xbf16> to vector<8x16x4xbf16>
    %35 = vector.extract_strided_slice %32 {offsets = [0, 2, 0], sizes = [8, 16, 4], strides = [1, 1, 1]} : vector<8x18x4xbf16> to vector<8x16x4xbf16>
    %36 = tpu.concatenate %33, %34, %35 in 2 : vector<8x16x4xbf16>, vector<8x16x4xbf16>, vector<8x16x4xbf16> -> vector<8x16x12xbf16>
    %37 = vector.shape_cast %36 : vector<8x16x12xbf16> to vector<128x12xbf16>
    %c2 = arith.constant 2 : index
    %c0_15 = arith.constant 0 : index
    %c0_16 = arith.constant 0 : index
    %38 = vector.load %arg3[%c2, %c0_15, %c0_16] : memref<3x12x128xbf16, #tpu.memory_space<vmem>>, vector<1x12x128xbf16>
    %39 = vector.shape_cast %38 : vector<1x12x128xbf16> to vector<12x128xbf16>
    %cst_17 = arith.constant dense<0.000000e+00> : vector<128x128xf32>
    %40 = tpu.matmul %37, %39, %cst_17 {dimension_numbers = #tpu.dot_dimension_numbers<[1], [0], [0], [1], [0, 0, 1, 1], [], []>} : vector<128x12xbf16>, vector<12x128xbf16>, vector<128x128xf32> -> vector<128x128xf32>
    %41 = arith.addf %28, %40 : vector<128x128xf32>
    %c0_18 = arith.constant 0 : index
    %c0_19 = arith.constant 0 : index
    %42 = vector.load %arg4[%c0_18, %c0_19] : memref<1x128xf32, #tpu.memory_space<vmem>>, vector<1x128xf32>
    %43 = vector.shape_cast %42 : vector<1x128xf32> to vector<128xf32>
    %44 = vector.shape_cast %43 : vector<128xf32> to vector<1x128xf32>
    %45 = vector.broadcast %44 : vector<1x128xf32> to vector<128x128xf32>
    %46 = arith.addf %41, %45 : vector<128x128xf32>
    %47 = vector.shape_cast %46 : vector<128x128xf32> to vector<1x8x16x128xf32>
    %c0_20 = arith.constant 0 : index
    %c0_21 = arith.constant 0 : index
    %c0_22 = arith.constant 0 : index
    %c0_23 = arith.constant 0 : index
    %48 = vector.load %arg5[%c0_20, %c0_21, %c0_22, %c0_23] : memref<1x8x16x128xf32, #tpu.memory_space<vmem>>, vector<1x8x16x128xf32>
    tpu.vector_store %arg5[%c0_20, %c0_21, %c0_22, %c0_23], %47 {strides = array<i32>} : memref<1x8x16x128xf32, #tpu.memory_space<vmem>>, vector<1x8x16x128xf32>,
    return
  }
  func.func @transform_0(%arg0: i32, %arg1: i32) -> (i32, i32, i32, i32) {
    %c0_i32 = arith.constant 0 : i32
    %c0_i32_0 = arith.constant 0 : i32
    %c0_i32_1 = arith.constant 0 : i32
    %c0_i32_2 = arith.constant 0 : i32
    return %arg0, %c0_i32, %c0_i32_0, %c0_i32_1 : i32, i32, i32, i32
  }
  func.func @transform_1(%arg0: i32, %arg1: i32) -> (i32, i32, i32) {
    %c0_i32 = arith.constant 0 : i32
    %c0_i32_0 = arith.constant 0 : i32
    %c0_i32_1 = arith.constant 0 : i32
    %c0_i32_2 = arith.constant 0 : i32
    return %c0_i32, %c0_i32_0, %c0_i32_1 : i32, i32, i32
  }
  func.func @transform_2(%arg0: i32, %arg1: i32) -> (i32, i32) {
    %c0_i32 = arith.constant 0 : i32
    %c0_i32_0 = arith.constant 0 : i32
    %c0_i32_1 = arith.constant 0 : i32
    return %c0_i32, %c0_i32_0 : i32, i32
  }
  func.func @transform_3(%arg0: i32, %arg1: i32) -> (i32, i32, i32, i32) {
    %c0_i32 = arith.constant 0 : i32
    %c0_i32_0 = arith.constant 0 : i32
    %c0_i32_1 = arith.constant 0 : i32
    return %arg0, %arg1, %c0_i32, %c0_i32_0 : i32, i32, i32, i32
  }
}

</mosaic_0001>

<bundles_post_ra>
// kernel: tpu_custom_call.1
= control target key start
LH: loop header
LB: loop body
LE: loop exit
PB: predicated region body
PF: predicated region fallthrough
CT: control target
= control target key end

     0   :  { %8 = vsyncpa [#allocation3], 0  ;;  %s2669_s0 = inlined_call_operand.vmem [shape: bf16[2,18,18,4], index: 0, kind: input, shape index: {}]   ;;  %s2670_s1 = inlined_call_operand.vmem [shape: bf16[3,12,128], index: 1, kind: input, shape index: {}]   ;;  %s2671_s2 = inlined_call_operand.vmem [shape: f32[1,128], index: 2, kind: input, shape index: {}]   ;;  %s2672_s3 = inlined_call_operand.hbm [shape: f32[2,16,16,128], index: 3, kind: output, shape index: {}]  }
   0x1   :  { %10 = vsyncpa [#allocation3 + $0x1], 0  ;;  %s2064_s12 = smov 0   ;;  %s2066_s13 = smov 0  }
   0x2   :  { %s2068_s14 = smov 0   ;;  %s2070_s15 = smov 0  }
   0x3   :  { %s2072_s16 = smov 0   ;;  %s2074_s17 = smov 0  }
   0x4   :  { %s2076_s18 = smov 0   ;;  %s2078_s19 = smov 0  }
   0x5 LB: > { %s1548_s20 = sadd.s32 4294967295, %s2038_s19   ;;  %s1549_s21 = sadd.s32 4294967294, %s2038_s19   ;;  %s2038_s19 = sphi %s2078_s19, %s16_s19   ;;  %s2034_s18 = sphi %s2076_s18, %s2681_s18   ;;  %s2030_s17 = sphi %s2074_s17, %s2680_s17   ;;  %s2026_s16 = sphi %s2072_s16, %s2679_s16   ;;  %s2022_s15 = sphi %s2070_s15, %s2678_s15   ;;  %s2018_s14 = sphi %s2068_s14, %s2677_s14   ;;  %s2014_s13 = sphi %s2066_s13, %s2676_s13   ;;  %s2010_s12 = sphi %s2064_s12, %s2675_s12  }
   0x6   : > { %s25_s22 = sadd.s32 1, %s2030_s17  ;;  %s28_s23 = sadd.s32 1, %s2034_s18 }
   0x7   : > { %p26_p0 = scmp.ge.s32.totalorder %s25_s22, 2  ;;  %p115_p1 = scmp.ne.s32.totalorder %s2018_s14, %s2014_s13 }
   0x8   : > { %p116_p2 = scmp.eq.s32.totalorder %s1548_s20, 3  ;;  %p121_p5 = scmp.ne.s32.totalorder %s2014_s13, %s2010_s12 }
   0x9   : > { %s2683_s22 = smov (%p26_p0, %s25_s22), 0  ;;  %s2685_s23 = smov (!%p26_p0, %s28_s23), %s2034_s18 }
   0xa   : > { %s101_s24 = ssub.s32 %s2030_s17, %s2683_s22  ;;  %p2115_p3 = por %p116_p2, %p115_p1 }
   0xb   : > { %p30_p4 = scmp.ge.s32.totalorder %s2685_s23, 2  ;;  %p122_p6 = scmp.eq.s32.totalorder %s1549_s21, 3 }
   0xc   : > { %p1552_p7 = scmp.ge.s32.totalorder %s2038_s19, 1  ;;  %p154_p9 = scmp.lt.s32.totalorder %s2038_s19, 5 }
   0xd   : > { %s2687_s23 = smov (%p30_p4, %s2685_s23), 0  ;;  %p2124_p8 = por %p122_p6, %p121_p5 }
   0xe   : > { %s100_s27 = ssub.s32 %s2034_s18, %s2687_s23  ;;  %s105_s28 = sadd.s32 1, %s2018_s14 }
   0xf   : > { %s102_s29 = sor.u32 %s101_s24, %s100_s27  ;;  %p155_p10 = pnand %p1552_p7, %p154_p9 }
  0x10   : > { %p103_p11 = scmp.eq.s32.totalorder %s102_s29, 0  ;;  %p178_p12 = scmp.lt.s32.totalorder (!%p155_p10), %s2026_s16, 1  ;;  %vm390_vm0 = vcmask (!%p155_p10), 1046528   ;;  %vm277_vm1 = vsmask.f32 (!%p155_p10), 7424  ;;  %vm768_vm2 = vcmask (!%p155_p10), 1045504  }
  0x11   : > { %158 = sbr.rel (%p155_p10) target bundleno = 478 (0x1de), region = 32  ;;  %s2040_s11 = smov (!%p155_p10), 8   ;;  %vm431_vm3 = vcmask (!%p155_p10), 31744   ;;  %vm448_vm4 = vcmask (!%p155_p10), 64512   ;;  %vm751_vm5 = vcmask (!%p155_p10), 97280  }
  0x12   : > { %s2133_s30 = scalar_select %p103_p11, %s2018_s14, %s105_s28  }
  0x13   : > { %s1697_s5 = smul.u32 (!%p155_p10), 96, %s2022_s15  ;;  %s2041_s20 = smov (!%p155_p10), 4  }
  0x18   : > { %s179_s4 = scalar_select %p178_p12, %s2026_s16, 1 }
  0x1a   : > { %s1818_s6 = smul.u32 216, %s179_s4 }
  0x1c   : > { %s182_s9 = scalar_lea.vmem %s2669_s0, %s1818_s6 }
  0x1d   : > { %s2141_s10 = scalar_lea.vmem %s182_s9, %s1697_s5  ;;  %s175_s5 = sand.u32 1, %s2014_s13  }
  0x1e   : > { %v2144_v0 = vld [vmem:[%s2141_s10 + $0xc] sm:$0xff]   ;;  %v1894_v1 = vld [vmem:[%s2141_s10 + $0x14] ss:$0 sps:$4 sm:$0x11]   ;;  %v2148_v2 = vld [vmem:[%s2141_s10] sm:$0xff]   ;;  %s1553_s6 = sshll.u32 %s175_s5, 7 }
  0x1f   : > { %v394_v3 = vrot.slane %v2144_v0, 1  ;;  %v395_v4 = vrot.slane %v1894_v1, 1  ;;  %v1896_v5 = vld [vmem:[%s2141_s10 + $0x8] ss:$0 sps:$4 sm:$0x11]   ;;  %v2153_v6 = vld [vmem:[%s2141_s10 + $0xc] sm:$0xff]  }
  0x20   : > { %v391_v7 = vrot.slane %v2148_v2, 1  ;;  %v279_v8 = vshrl.u32 %v2148_v2, 16  ;;  %v392_v10 = vrot.slane %v1896_v5, 1  ;;  %v1898_v11 = vld [vmem:[%s2141_s10 + $0x14] ss:$0 sps:$4 sm:$0x11]  }
  0x21   : > { %v396_v9 = vsel %vm390_vm0, %v394_v3, %v395_v4  ;;  %v671_v12 = vrot.slane %v2153_v6, 1  ;;  %v281_v13 = vshll.u32 %v2148_v2, 16  ;;  %v286_v14 = vshll.u32 %v1896_v5, 16  ;;  %v2163_v15 = vld [vmem:[%s2141_s10 + $0x18] sm:$0xff]   ;;  %v2175_v31 = vld [vmem:[%s2141_s10 + $0x24] sm:$0xff]   ;;  %v2203_v60 = vld [vmem:[%s2141_s10 + $0x30] sm:$0xff]  }
  0x22   : > { %417 = vrot.lane.b32.xlu0 %v396_v9, %s2040_s11  ;;  %v393_v16 = vsel %vm390_vm0, %v391_v7, %v392_v10  ;;  %v672_v17 = vrot.slane %v1898_v11, 1  ;;  %v560_v18 = vshrl.u32 %v2153_v6, 16  ;;  %v1900_v21 = vld [vmem:[%s2141_s10 + $0x20] ss:$0 sps:$4 sm:$0x11]   ;;  %v674_v22 = vrot.slane %v2163_v15, 1 }
  0x23   : > { %415 = vrot.lane.b32.xlu1 %v393_v16, %s2040_s11  ;;  %v283_v19 = vrot.slane %v281_v13, 1  ;;  %v288_v20 = vrot.slane %v286_v14, 1  ;;  %v562_v24 = vshll.u32 %v2153_v6, 16  ;;  %v567_v25 = vshll.u32 %v1898_v11, 16  ;;  %v2186_v41 = vld [vmem:[%s2141_s10 + $0x18] sm:$0xff]   ;;  %v2195_v53 = vld [vmem:[%s2141_s10 + $0x24] sm:$0xff]  }
  0x24   : > { %v673_v23 = vsel %vm390_vm0, %v671_v12, %v672_v17  ;;  %v291_v26 = vshrl.u32 %v2144_v0, 16  ;;  %v675_v28 = vrot.slane %v1900_v21, 1  ;;  %v293_v29 = vshll.u32 %v2144_v0, 16  ;;  %v2183_v40 = vld [vmem:[%s2141_s10 + $0x2c] ss:$0 sps:$4 sm:$0x11]  }
  0x25   : > { %v284_v27 = vor.u32 %v283_v19, %v279_v8  ;;  %v298_v30 = vshll.u32 %v1894_v1, 16  ;;  %v564_v32 = vrot.slane %v562_v24, 1  ;;  %v569_v33 = vrot.slane %v567_v25, 1  ;;  %v1904_v52 = vld [vmem:[%s2141_s10 + $0x20] ss:$0 sps:$4 sm:$0x11]  }
  0x26   : > { %v572_v34 = vshrl.u32 %v2163_v15, 16  ;;  %v574_v35 = vshll.u32 %v2163_v15, 16  ;;  %v676_v37 = vsel %vm390_vm0, %v674_v22, %v675_v28  ;;  %v295_v38 = vrot.slane %v293_v29, 1  ;;  %v2207_v1 = vld [vmem:[%s2141_s10 + $0x2c] ss:$0 sps:$4 sm:$0x11]  }
  0x27   : > { %695 = vrot.lane.b32.xlu1 %v673_v23, %s2040_s11  ;;  %v289_v36 = vsel %vm277_vm1, %v284_v27, %v288_v20  ;;  %v300_v39 = vrot.slane %v298_v30, 1  ;;  %v565_v42 = vor.u32 %v564_v32, %v560_v18  ;;  %v579_v44 = vshll.u32 %v1900_v21, 16  ;;  %v1908_v13 = vld [vmem:[%s2141_s10 + $0x38] ss:$0 sps:$4 sm:$0x11]   ;;  %v2224_v22 = vld [vmem:[%s2141_s10 + $0x3c] sm:$0xff]  }
  0x28   : > { %374 = vrot.lane.b32.xlu0 %v289_v36, %s2041_s20  ;;  %v576_v43 = vrot.slane %v574_v35, 1  ;;  %v584_v45 = vshrl.u32 %v2175_v31, 16  ;;  %v296_v46 = vor.u32 %v295_v38, %v291_v26  ;;  %v586_v47 = vshll.u32 %v2175_v31, 16  ;;  %v2221_v19 = vld [vmem:[%s2141_s10 + $0x18] sm:$0xff]   ;;  %v2232_v26 = vld [vmem:[%s2141_s10 + $0x48] sm:$0xff]   ;;  %s2572_s9 = scalar_lea.vmem [#allocation2], %s1553_s6 }
  0x29   : > { %v591_v48 = vshll.u32 %v2183_v40, 16  ;;  %v570_v49 = vsel %vm277_vm1, %v565_v42, %v569_v33  ;;  %v581_v51 = vrot.slane %v579_v44, 1  ;;  %v303_v55 = vshrl.u32 %v2186_v41, 16  ;;  %v2229_v25 = vld [vmem:[%s2141_s10 + $0x20] ss:$0 sps:$4 sm:$0x11]  }
  0x2a   : > { %v577_v50 = vor.u32 %v576_v43, %v572_v34  ;;  %v588_v54 = vrot.slane %v586_v47, 1  ;;  %v305_v56 = vshll.u32 %v2186_v41, 16  ;;  %v301_v57 = vsel %vm277_vm1, %v296_v46, %v300_v39  ;;  %v2249_v46 = vld [vmem:[%s2141_s10 + $0x50] ss:$0 sps:$4 sm:$0x11]   ;;  %s2616_s29 = scalar_lea.sflag [#allocation3], %s175_s5 }
  0x2b   : > { %697 = vrot.lane.b32.xlu1 %v676_v37, %s2040_s11  ;;  %v593_v58 = vrot.slane %v591_v48, 1  ;;  %v310_v59 = vshll.u32 %v1904_v52, 16  ;;  %v315_v4 = vshrl.u32 %v2195_v53, 16  ;;  %v317_v5 = vshll.u32 %v2195_v53, 16  ;;  %s2042_s6 = smov [#allocation2]  }
  0x2c   : > { %655 = vrot.lane.b32.xlu0 %v570_v49, %s2041_s20  ;;  %v582_v61 = vsel %vm277_vm1, %v577_v50, %v581_v51  ;;  %v589_v62 = vor.u32 %v588_v54, %v584_v45  ;;  %v307_v63 = vrot.slane %v305_v56, 1  ;;  %v322_v8 = vshll.u32 %v2207_v1, 16  ;;  %v1912_v37 = vld [vmem:[%s2141_s10 + $0x44] ss:$0 sps:$4 sm:$0x11]   ;;  %s1948_s7 = sshll.u32 %s2042_s6, 4  ;;  %s1949_s7 = int_to_ptr.vmem [resolvable:$false] %s1948_s7 }
  0x2d   : > { %v312_v3 = vrot.slane %v310_v59, 1  ;;  %v397_v10 = vrot.slane %v2186_v41, 1  ;;  %v398_v11 = vrot.slane %v1904_v52, 1  ;;  %v319_v12 = vrot.slane %v317_v5, 1  ;;  %v2256_v51 = vld [vmem:[%s2141_s10 + $0x24] sm:$0xff]   ;;  %s1950_s8 = scalar_lea.vmem %s1949_s7, 4096 }
  0x2e   : > { %v308_v7 = vor.u32 %v307_v63, %v303_v55  ;;  %v594_v9 = vsel %vm277_vm1, %v589_v62, %v593_v58  ;;  %v324_v16 = vrot.slane %v322_v8, 1  ;;  %v596_v17 = vshrl.u32 %v2203_v60, 16 }
  0x2f   : > { %376 = vrot.lane.b32.xlu1 %v301_v57, %s2041_s20  ;;  %v598_v18 = vshll.u32 %v2203_v60, 16  ;;  %v320_v20 = vor.u32 %v319_v12, %v315_v4  ;;  %v603_v21 = vshll.u32 %v1908_v13, 16  ;;  %v677_v23 = vrot.slane %v2175_v31, 1  ;;  %v2269_v4 = vld [vmem:[%s2141_s10 + $0x30] sm:$0xff]  }
  0x30   : > { %657 = vrot.lane.b32.xlu0 %v582_v61, %s2041_s20  ;;  %v313_v14 = vsel %vm277_vm1, %v308_v7, %v312_v3  ;;  %v399_v27 = vsel %vm390_vm0, %v397_v10, %v398_v11  ;;  %v678_v28 = vrot.slane %v2183_v40, 1  ;;  %v680_v29 = vrot.slane %v2203_v60, 1  ;;  %v1916_v61 = vld [vmem:[%s2141_s10 + $0x2c] ss:$0 sps:$4 sm:$0x11]  }
  0x31   : > { %v600_v24 = vrot.slane %v598_v18, 1  ;;  %v325_v30 = vsel %vm277_vm1, %v320_v20, %v324_v16  ;;  %v605_v33 = vrot.slane %v603_v21, 1  ;;  %v1085_v34 = vshll.u32 %v2221_v19, 16  ;;  %v2283_v20 = vld [vmem:[%s2141_s10 + $0x38] ss:$0 sps:$4 sm:$0x11]  }
  0x32   : > { %v681_v35 = vrot.slane %v1908_v13, 1  ;;  %v1083_v36 = vshrl.u32 %v2221_v19, 16  ;;  %v610_v38 = vshll.u32 %v2224_v22, 16  ;;  %v1090_v39 = vshll.u32 %v2229_v25, 16  ;;  %v2286_v21 = vld [vmem:[%s2141_s10 + $0x60] sm:$0xff]  }
  0x33   : > { %659 = vrot.lane.b32.xlu1 %v594_v9, %s2041_s20  ;;  %v601_v32 = vor.u32 %v600_v24, %v596_v17  ;;  %v608_v40 = vshrl.u32 %v2224_v22, 16  ;;  %v679_v42 = vsel %vm390_vm0, %v677_v23, %v678_v28  ;;  %v1087_v43 = vrot.slane %v1085_v34, 1 }
  0x34   : > { %378 = vrot.lane.b32.xlu0 %v313_v14, %s2041_s20  ;;  %v612_v44 = vrot.slane %v610_v38, 1  ;;  %v615_v45 = vshll.u32 %v1912_v37, 16  ;;  %v400_v48 = vrot.slane %v2195_v53, 1  ;;  %v401_v49 = vrot.slane %v2207_v1, 1  ;;  %v2276_v14 = vld [vmem:[%s2141_s10 + $0x54] sm:$0xff]  }
  0x35   : > { %v606_v47 = vsel %vm277_vm1, %v601_v32, %v605_v33  ;;  %v622_v50 = vshll.u32 %v2232_v26, 16  ;;  %v1092_v52 = vrot.slane %v1090_v39, 1  ;;  %v620_v55 = vshrl.u32 %v2232_v26, 16 }
  0x36   : > { %v617_v54 = vrot.slane %v615_v45, 1  ;;  %v682_v56 = vsel %vm390_vm0, %v680_v29, %v681_v35  ;;  %v1088_v57 = vor.u32 %v1087_v43, %v1083_v36  ;;  %v613_v58 = vor.u32 %v612_v44, %v608_v40 }
  0x37   : > { %419 = vrot.lane.b32.xlu1 %v399_v27, %s2040_s11  ;;  %v627_v59 = vshll.u32 %v2249_v46, 16  ;;  %v402_v62 = vsel %vm390_vm0, %v400_v48, %v401_v49  ;;  %v624_v63 = vrot.slane %v622_v50, 1  ;;  %v1097_v1 = vshll.u32 %v2256_v51, 16  ;;  %v1920_v27 = vld [vmem:[%s2141_s10 + $0x5c] ss:$0 sps:$4 sm:$0x11]  }
  0x38   : > { %380 = vrot.lane.b32.xlu0 %v325_v30, %s2041_s20  ;;  %v683_v3 = vrot.slane %v2224_v22, 1  ;;  %v1093_v5 = vsel %vm277_vm1, %v1088_v57, %v1092_v52  ;;  %v618_v7 = vsel %vm277_vm1, %v613_v58, %v617_v54  ;;  %v684_v8 = vrot.slane %v1912_v37, 1  ;;  %v2300_v37 = vld [vmem:[%s2141_s10 + $0x68] ss:$0 sps:$4 sm:$0x11]  }
  0x39   : > { %v1095_v9 = vshrl.u32 %v2256_v51, 16  ;;  %v625_v10 = vor.u32 %v624_v63, %v620_v55  ;;  %v629_v11 = vrot.slane %v627_v59, 1  ;;  %v1099_v12 = vrot.slane %v1097_v1, 1  ;;  %v1924_v55 = vld [vmem:[%s2141_s10 + $0x44] ss:$0 sps:$4 sm:$0x11]  }
  0x3a   : > { %v1102_v13 = vshll.u32 %v1916_v61, 16  ;;  %v1194_v16 = vrot.slane %v2221_v19, 1  ;;  %v1195_v17 = vrot.slane %v2229_v25, 1  ;;  %v1197_v18 = vrot.slane %v2256_v51, 1  ;;  %v2322_v1 = vld [vmem:[%s2141_s10 + $0x48] sm:$0xff]  }
  0x3b   : > { %699 = vrot.lane.b32.xlu1 %v679_v42, %s2040_s11  ;;  %v685_v23 = vsel %vm390_vm0, %v683_v3, %v684_v8  ;;  %v1109_v24 = vshll.u32 %v2269_v4, 16  ;;  %v630_v28 = vsel %vm277_vm1, %v625_v10, %v629_v11  ;;  %v1100_v29 = vor.u32 %v1099_v12, %v1095_v9  ;;  %v2328_v11 = vld [vmem:[%s2141_s10 + $0x30] sm:$0xff]  }
  0x3c   : > { %661 = vrot.lane.b32.xlu0 %v606_v47, %s2041_s20  ;;  %v1104_v30 = vrot.slane %v1102_v13, 1  ;;  %v634_v25 = vshll.u32 %v2276_v14, 16  ;;  %v1198_v32 = vrot.slane %v1916_v61, 1  ;;  %v686_v33 = vrot.slane %v2232_v26, 1 }
  0x3d   : > { %v687_v34 = vrot.slane %v2249_v46, 1  ;;  %v1107_v35 = vshrl.u32 %v2269_v4, 16  ;;  %v1114_v36 = vshll.u32 %v2283_v20, 16  ;;  %v1196_v38 = vsel %vm390_vm0, %v1194_v16, %v1195_v17  ;;  %v2308_v46 = vld [vmem:[%s2141_s10 + $0x3c] sm:$0xff]  }
  0x3e   : > { %v1111_v39 = vrot.slane %v1109_v24, 1  ;;  %v632_v40 = vshrl.u32 %v2276_v14, 16  ;;  %v1105_v42 = vsel %vm277_vm1, %v1100_v29, %v1104_v30  ;;  %v636_v43 = vrot.slane %v634_v25, 1  ;;  %v2334_v16 = vld [vmem:[%s2141_s10 + $0x50] ss:$0 sps:$4 sm:$0x11]  }
  0x3f   : > { %701 = vrot.lane.b32.xlu1 %v682_v56, %s2040_s11  ;;  %v639_v44 = vshll.u32 %v1920_v27, 16  ;;  %v646_v45 = vshll.u32 %v2286_v21, 16  ;;  %v1116_v47 = vrot.slane %v1114_v36, 1  ;;  %v644_v48 = vshrl.u32 %v2286_v21, 16 }
  0x40   : > { %421 = vrot.lane.b32.xlu0 %v402_v62, %s2040_s11  ;;  %v1199_v49 = vsel %vm390_vm0, %v1197_v18, %v1198_v32  ;;  %v688_v50 = vsel %vm390_vm0, %v686_v33, %v687_v34  ;;  %v1112_v52 = vor.u32 %v1111_v39, %v1107_v35  ;;  %v651_v54 = vshll.u32 %v2300_v37, 16  ;;  %v1928_v25 = vld [vmem:[%s2141_s10 + $0x38] ss:$0 sps:$4 sm:$0x11]  }
  0x41   : > { %v637_v56 = vor.u32 %v636_v43, %v632_v40  ;;  %v641_v57 = vrot.slane %v639_v44, 1  ;;  %v648_v58 = vrot.slane %v646_v45, 1  ;;  %v1121_v59 = vshll.u32 %v2308_v46, 16  ;;  %v2353_v39 = vld [vmem:[%s2141_s10 + $0x54] sm:$0xff]  }
  0x42   : > { %v689_v61 = vrot.slane %v2276_v14, 1  ;;  %v690_v62 = vrot.slane %v1920_v27, 1  ;;  %v1119_v63 = vshrl.u32 %v2308_v46, 16  ;;  %v1117_v3 = vsel %vm277_vm1, %v1112_v52, %v1116_v47 }
  0x43   : > { %1178 = vrot.lane.b32.xlu1 %v1093_v5, %s2041_s20  ;;  %v653_v5 = vrot.slane %v651_v54, 1  ;;  %v642_v8 = vsel %vm277_vm1, %v637_v56, %v641_v57  ;;  %v649_v9 = vor.u32 %v648_v58, %v644_v48  ;;  %v1123_v10 = vrot.slane %v1121_v59, 1  ;;  %v1932_v58 = vld [vmem:[%s2141_s10 + $0x5c] ss:$0 sps:$4 sm:$0x11]  }
  0x44   : > { %663 = vrot.lane.b32.xlu0 %v618_v7, %s2041_s20  ;;  %v1126_v7 = vshll.u32 %v1924_v55, 16  ;;  %v1200_v12 = vrot.slane %v2269_v4, 1  ;;  %v1201_v13 = vrot.slane %v2283_v20, 1  ;;  %v1133_v17 = vshll.u32 %v2322_v1, 16 }
  0x45   : > { %v691_v18 = vsel %vm390_vm0, %v689_v61, %v690_v62  ;;  %v1204_v24 = vrot.slane %v1924_v55, 1  ;;  %v692_v27 = vrot.slane %v2286_v21, 1  ;;  %v654_v20 = vsel %vm277_vm1, %v649_v9, %v653_v5  ;;  %v1941_v61 = vld [vmem:[%s2670_s1 + $0x8] sm:$0x3f]   ;;  %v1942_v62 = vld [vmem:[%s2670_s1] sm:$0x3f]  }
  0x46   : > { %v1124_v29 = vor.u32 %v1123_v10, %v1119_v63  ;;  %v1128_v30 = vrot.slane %v1126_v7, 1  ;;  %v329_v32 = vshll.u32 %v2328_v11, 16  ;;  %v693_v33 = vrot.slane %v2300_v37, 1  ;;  %v2380_v7 = vld [vmem:[%s2141_s10 + $0x60] sm:$0xff]   ;;  %1814 = vmatprep.subr.msk.bf16.mxu1 %vm768_vm2, %v1941_v61  ;;  %1815 = vmatprep.subr.msk.bf16.mxu0 %vm768_vm2, %v1942_v62 }
  0x47   : > { %703 = vrot.lane.b32.xlu1 %v685_v23, %s2040_s11  ;;  %v1203_v23 = vrot.slane %v2308_v46, 1  ;;  %v1131_v34 = vshrl.u32 %v2322_v1, 16  ;;  %v1135_v35 = vrot.slane %v1133_v17, 1  ;;  %v1138_v36 = vshll.u32 %v2334_v16, 16 }
  0x48   : > { %665 = vrot.lane.b32.xlu0 %v630_v28, %s2041_s20  ;;  %v2342_v28 = vld [vmem:[%s2141_s10 + $0x3c] sm:$0xff]   ;;  %v1202_v40 = vsel %vm390_vm0, %v1200_v12, %v1201_v13  ;;  %v1129_v43 = vsel %vm277_vm1, %v1124_v29, %v1128_v30  ;;  %v331_v44 = vrot.slane %v329_v32, 1  ;;  %v334_v45 = vshll.u32 %v1928_v25, 16  ;;  %v2388_v13 = vld [vmem:[%s2141_s10 + $0x48] sm:$0xff]  }
  0x49   : > { %v341_v37 = vshll.u32 %v2342_v28, 16  ;;  %v1136_v47 = vor.u32 %v1135_v35, %v1131_v34  ;;  %v1140_v48 = vrot.slane %v1138_v36, 1  ;;  %v694_v55 = vsel %vm390_vm0, %v692_v27, %v693_v33  ;;  %v2413_v35 = vld [vmem:[%s2141_s10 + $0x54] sm:$0xff]  }
  0x4a   : > { %v336_v57 = vrot.slane %v334_v45, 1  ;;  %v1145_v59 = vshll.u32 %v2353_v39, 16  ;;  %v404_v5 = vrot.slane %v1928_v25, 1  ;;  %v1143_v12 = vshrl.u32 %v2353_v39, 16 }
  0x4b   : > { %1218 = vrot.lane.b32.xlu1 %v1196_v38, %s2040_s11  ;;  %v327_v38 = vshrl.u32 %v2328_v11, 16  ;;  %v343_v52 = vrot.slane %v341_v37, 1  ;;  %v1141_v63 = vsel %vm277_vm1, %v1136_v47, %v1140_v48  ;;  %v1206_v27 = vrot.slane %v2322_v1, 1  ;;  %v2404_v25 = vld [vmem:[%s2141_s10 + $0x68] ss:$0 sps:$4 sm:$0x11]  }
  0x4c   : > { %1180 = vrot.lane.b32.xlu0 %v1105_v42, %s2041_s20  ;;  %v2358_v42 = vld [vmem:[%s2141_s10 + $0x44] ss:$0 sps:$4 sm:$0x11]   ;;  %v2397_v29 = vsel %vm768_vm2, %v1942_v62, 0  ;;  %v1157_v32 = vshll.u32 %v2380_v7, 16  ;;  %v353_v34 = vshll.u32 %v2388_v13, 16 }
  0x4d   : > { %v346_v54 = vshll.u32 %v2358_v42, 16  ;;  %v332_v56 = vor.u32 %v331_v44, %v327_v38  ;;  %1745 = vmatpush3.bf16.msra.mxu0 %v2397_v29  ;;  %v1210_v44 = vrot.slane %v1932_v58, 1  ;;  %v1155_v45 = vshrl.u32 %v2380_v7, 16 }
  0x4e   : > { %v1159_v47 = vrot.slane %v1157_v32, 1  ;;  %v351_v48 = vshrl.u32 %v2388_v13, 16 }
  0x4f   : > { %1220 = vrot.lane.b32.xlu1 %v1199_v49, %s2040_s11  ;;  %v1205_v49 = vsel %vm390_vm0, %v1203_v23, %v1204_v24  ;;  %v348_v10 = vrot.slane %v346_v54, 1  ;;  %v337_v17 = vsel %vm277_vm1, %v332_v56, %v336_v57  ;;  %v1150_v23 = vshll.u32 %v1932_v58, 16  ;;  %v1938_v58 = vld [vmem:[%s2141_s10 + $0x5c] ss:$0 sps:$4 sm:$0x11]  }
  0x50   : > { %705 = vrot.lane.b32.xlu0 %v688_v50, %s2040_s11  ;;  %v339_v50 = vshrl.u32 %v2342_v28, 16  ;;  %v770_v24 = vsel %vm768_vm2, %v1941_v61, 0  ;;  %v365_v54 = vshll.u32 %v2413_v35, 16  ;;  %v406_v56 = vrot.slane %v2342_v28, 1 }
  0x51   : > { %1727 = vmatpush3.bf16.msra.mxu1 %v770_v24  ;;  %v407_v57 = vrot.slane %v2358_v42, 1  ;;  %v1940_v42 = vld [vmem:[%s2141_s10 + $0x74] ss:$0 sps:$4 sm:$0x11]  }
  0x52   : > { %v344_v9 = vor.u32 %v343_v52, %v339_v50  ;;  %1816 = vmatprep.subr.msk.bf16.mxu1 %vm768_vm2, %v1942_v62  ;;  %v355_v50 = vrot.slane %v353_v34, 1  ;;  %v1160_v62 = vor.u32 %v1159_v47, %v1155_v45 }
  0x53   : > { %1182 = vrot.lane.b32.xlu1 %v1117_v3, %s2041_s20  ;;  %v403_v3 = vrot.slane %v2328_v11, 1 }
  0x54   : > { %667 = vrot.lane.b32.xlu0 %v642_v8, %s2041_s20  ;;  %v1943_v8 = vld [vmem:[%s2670_s1 + $0x10] sm:$0x3f]   ;;  %v349_v36 = vsel %vm277_vm1, %v344_v9, %v348_v10  ;;  %v367_v9 = vrot.slane %v365_v54, 1  ;;  %v408_v10 = vsel %vm390_vm0, %v406_v56, %v407_v57 }
  0x55   : > { %v2400_v30 = vsel %vm768_vm2, %v1943_v8, 0  ;;  %v405_v33 = vsel %vm390_vm0, %v403_v3, %v404_v5  ;;  %1817 = vmatprep.subr.msk.bf16.mxu0 %vm768_vm2, %v1943_v8  ;;  %v356_v5 = vor.u32 %v355_v50, %v351_v48  ;;  %v1216_v48 = vrot.slane %v1940_v42, 1 }
  0x56   : > { %v412_v50 = vrot.slane %v2413_v35, 1 }
  0x57   : > { %707 = vrot.lane.b32.xlu1 %v691_v18, %s2040_s11  ;;  %v1147_v18 = vrot.slane %v1145_v59, 1  ;;  %v2431_v59 = vld [vmem:[%s2141_s10 + $0x6c] sm:$0xff]  }
  0x58   : > { %669 = vrot.lane.b32.xlu0 %v654_v20, %s2041_s20  ;;  %v1207_v20 = vrot.slane %v2334_v16, 1  ;;  %v1936_v16 = vld [vmem:[%s2141_s10 + $0x50] ss:$0 sps:$4 sm:$0x11]   ;;  %v1215_v47 = vrot.slane %v2431_v59, 1  ;;  %s1698_s10 = sshll.u32 %s2022_s15, 4 }
  0x59   : > { %v1148_v38 = vor.u32 %v1147_v18, %v1143_v12  ;;  %v358_v52 = vshll.u32 %v1936_v16, 16  ;;  %v370_v12 = vshll.u32 %v1938_v58, 16  ;;  %v409_v18 = vrot.slane %v2388_v13, 1  ;;  %s1462_s15 = sshll.u32 %s2572_s9, 4  ;;  %s2610_s15 = int_to_ptr.vmem [resolvable:$true] %s1462_s15 }
  0x5a   : > { %v1208_v37 = vsel %vm390_vm0, %v1206_v27, %v1207_v20  ;;  %v410_v27 = vrot.slane %v1936_v16, 1  ;;  %s1944_s4 = scalar_lea.vmem %s2610_s15, 2048  ;;  %p1951_p2 = scmp.lt.s32.totalorder %s2610_s15, %s1949_s7 }
  0x5b   : > { %1222 = vrot.lane.b32.xlu1 %v1202_v40, %s2040_s11  ;;  %v1152_v40 = vrot.slane %v1150_v23, 1  ;;  %v360_v8 = vrot.slane %v358_v52, 1  ;;  %v372_v32 = vrot.slane %v370_v12, 1  ;;  %v413_v52 = vrot.slane %v1938_v58, 1  ;;  %p1945_p13 = scmp.ne.s32.totalorder %s2610_s15, %s1944_s4  ;;  %p1952_p4 = scmp.lt.s32.totalorder %s1950_s8, %s1944_s4 }
  0x5c   : > { %1184 = vrot.lane.b32.xlu0 %v1129_v43, %s2041_s20  ;;  %v1209_v43 = vrot.slane %v2353_v39, 1 }
  0x5d   : > { %v361_v24 = vsel %vm277_vm1, %v356_v5, %v360_v8  ;;  %v414_v54 = vsel %vm390_vm0, %v412_v50, %v413_v52  ;;  %p1946_p0 = pnand %p1945_p13, %p2115_p3  ;;  %p1953_p5 = por %p1952_p4, %p1951_p2 }
  0x5e   : > { %v1211_v61 = vsel %vm390_vm0, %v1209_v43, %v1210_v44 }
  0x5f   : > { %1224 = vrot.lane.b32.xlu1 %v1205_v49, %s2040_s11  ;;  %v1162_v49 = vshll.u32 %v2404_v25, 16  ;;  %p1947_p1 = pneg %p1946_p0 }
  0x60   : > { %709 = vrot.lane.b32.xlu0 %v694_v55, %s2040_s11  ;;  %v1153_v55 = vsel %vm277_vm1, %v1148_v38, %v1152_v40  ;;  %v411_v38 = vsel %vm390_vm0, %v409_v18, %v410_v27  ;;  %v1212_v40 = vrot.slane %v2380_v7, 1 }
  0x61   : > { %v1164_v3 = vrot.slane %v1162_v49, 1  ;;  %p1954_p6 = pnand %p1953_p5, %p1947_p1 }
  0x63   : > { %1186 = vrot.lane.b32.xlu1 %v1141_v63, %s2041_s20  ;;  %v363_v63 = vshrl.u32 %v2413_v35, 16  ;;  %v1165_v23 = vsel %vm277_vm1, %v1160_v62, %v1164_v3 }
  0x64   : > { %382 = vrot.lane.b32.xlu0 %v337_v17, %s2041_s20  ;;  %v1169_v17 = vshll.u32 %v2431_v59, 16 }
  0x65   : > { %v368_v20 = vor.u32 %v367_v9, %v363_v63 }
  0x66   : > { %v1171_v34 = vrot.slane %v1169_v17, 1 }
  0x67   : > { %423 = vrot.lane.b32.xlu1 %v405_v33, %s2040_s11  ;;  %v1167_v33 = vshrl.u32 %v2431_v59, 16  ;;  %v373_v43 = vsel %vm277_vm1, %v368_v20, %v372_v32 }
  0x68   : > { %384 = vrot.lane.b32.xlu0 %v349_v36, %s2041_s20  ;;  %v1174_v36 = vshll.u32 %v1940_v42, 16 }
  0x69   : > { %v1172_v44 = vor.u32 %v1171_v34, %v1167_v33 }
  0x6a   : > { %v1176_v16 = vrot.slane %v1174_v36, 1 }
  0x6b   : > { %1226 = vrot.lane.b32.xlu1 %v1208_v37, %s2040_s11  ;;  %v1213_v37 = vrot.slane %v2404_v25, 1  ;;  %v1217_v25 = vsel %vm390_vm0, %v1215_v47, %v1216_v48 }
  0x6c   : > { %1188 = vrot.lane.b32.xlu0 %v1153_v55, %s2041_s20  ;;  %v1177_v49 = vsel %vm277_vm1, %v1172_v44, %v1176_v16 }
  0x6d   : > { %v1214_v45 = vsel %vm390_vm0, %v1212_v40, %v1213_v37 }
  0x6f   : > { %1228 = vrot.lane.b32.xlu1 %v1211_v61, %s2040_s11 }
  0x70   : > { %425 = vrot.lane.b32.xlu0 %v408_v10, %s2040_s11 }
  0x73   : > { %1190 = vrot.lane.b32.xlu1 %v1165_v23, %s2041_s20 }
  0x74   : > { %386 = vrot.lane.b32.xlu0 %v361_v24, %s2041_s20 }
  0x77   : > { %427 = vrot.lane.b32.xlu1 %v411_v38, %s2040_s11 }
  0x78   : > { %388 = vrot.lane.b32.xlu0 %v373_v43, %s2041_s20 }
  0x7b   : > { %1230 = vrot.lane.b32.xlu1 %v1214_v45, %s2040_s11 }
  0x7c   : > { %1192 = vrot.lane.b32.xlu0 %v1177_v49, %s2041_s20  ;;  %s1693_s20 = sshll.u32 %s2026_s16, 5 }
  0x7d   : > { %s1459_s21 = sadd.s32 %s1698_s10, %s1693_s20 }
  0x7e   : > { %s1694_s24 = sshll.u32 %s1459_s21, 7 }
  0x7f   : > { %1232 = vrot.lane.b32.xlu1 %v1217_v25, %s2040_s11  ;;  %s2606_s28 = scalar_lea.hbm %s2672_s3, %s1694_s24 }
  0x80   : > { %429 = vrot.lane.b32.xlu0 %v414_v54, %s2040_s11 }
  0x94   : > { %v418_v55 = vpop.permute.xlu0 %417 }
  0x95   : > { %v416_v56 = vpop.permute.xlu1 %415 }
  0x99   : > { %v696_v57 = vpop.permute.xlu1 %695 }
  0x9a   : > { %v375_v61 = vpop.permute.xlu0 %374 }
  0x9b   : > { %v433_v58 = vsel %vm431_vm3, %v2148_v2, %v375_v61 }
  0x9c   : > { %v450_v62 = vsel %vm448_vm4, %v433_v58, %v416_v56 }
  0x9d   : > { %1746 = vmatprep.mubr.msk.bf16.mxu0 %vm751_vm5, %v450_v62  ;;  %v698_v63 = vpop.permute.xlu1 %697 }
  0x9e   : > { %v656_v3 = vpop.permute.xlu0 %655 }
  0x9f   : > { %v712_v5 = vsel %vm431_vm3, %v2153_v6, %v656_v3 }
  0xa0   : > { %v728_v8 = vsel %vm448_vm4, %v712_v5, %v696_v57 }
  0xa1   : > { %1728 = vmatprep.mubr.msk.bf16.mxu1 %vm751_vm5, %v728_v8  ;;  %v377_v9 = vpop.permute.xlu1 %376 }
  0xa2   : > { %v435_v10 = vsel %vm431_vm3, %v2144_v0, %v377_v9  ;;  %v658_v12 = vpop.permute.xlu0 %657 }
  0xa3   : > { %v714_v2 = vsel %vm431_vm3, %v2163_v15, %v658_v12  ;;  %v452_v42 = vsel %vm448_vm4, %v435_v10, %v418_v55 }
  0xa4   : > { %v730_v17 = vsel %vm448_vm4, %v714_v2, %v698_v63  ;;  %1747 = vmatmul.mubr.msk.bf16.vlgmr.msra.gmra.mrb[0].mxu0 %vm751_vm5, %v452_v42 }
  0xa5   : > { %1729 = vmatmul.mubr.msk.bf16.vlgmr.msra.gmra.mrb[0].mxu1 %vm751_vm5, %v730_v17  ;;  %v660_v6 = vpop.permute.xlu1 %659  ;;  %1763 = vmatpush3.bf16.msra.mxu0 %v2400_v30 }
  0xa6   : > { %v379_v18 = vpop.permute.xlu0 %378  ;;  %1781 = vmatpush3.bf16.msra.mxu1 %v2397_v29  ;;  %v716_v27 = vsel %vm431_vm3, %v2175_v31, %v660_v6 }
  0xa7   : > { %v437_v0 = vsel %vm431_vm3, %v2186_v41, %v379_v18 }
  0xa9   : > { %v420_v23 = vpop.permute.xlu1 %419 }
  0xaa   : > { %v454_v15 = vsel %vm448_vm4, %v437_v0, %v420_v23  ;;  %v381_v24 = vpop.permute.xlu0 %380 }
  0xab   : > { %1750 = vmatprep.mubr.msk.bf16.mxu0 %vm751_vm5, %v454_v15  ;;  %v439_v41 = vsel %vm431_vm3, %v2195_v53, %v381_v24 }
  0xad   : > { %v700_v20 = vpop.permute.xlu1 %699 }
  0xae   : > { %v732_v32 = vsel %vm448_vm4, %v716_v27, %v700_v20  ;;  %v662_v33 = vpop.permute.xlu0 %661 }
  0xaf   : > { %1732 = vmatprep.mubr.msk.bf16.mxu1 %vm751_vm5, %v732_v32  ;;  %v718_v29 = vsel %vm431_vm3, %v2203_v60, %v662_v33 }
  0xb1   : > { %v702_v30 = vpop.permute.xlu1 %701 }
  0xb2   : > { %v734_v34 = vsel %vm448_vm4, %v718_v29, %v702_v30  ;;  %v422_v36 = vpop.permute.xlu0 %421 }
  0xb3   : > { %v456_v38 = vsel %vm448_vm4, %v439_v41, %v422_v36  ;;  %1733 = vmatmul.mubr.msk.bf16.gmra.mrb[4].mxu1 %vm751_vm5, %v734_v34 }
  0xb4   : > { %1751 = vmatmul.mubr.msk.bf16.gmra.mrb[4].mxu0 %vm751_vm5, %v456_v38 }
  0xb5   : > { %v1179_v31 = vpop.permute.xlu1 %1178 }
  0xb6   : > { %v664_v40 = vpop.permute.xlu0 %663  ;;  %v1235_v53 = vsel %vm431_vm3, %v2221_v19, %v1179_v31 }
  0xb7   : > { %v720_v37 = vsel %vm431_vm3, %v2224_v22, %v664_v40 }
  0xb9   : > { %v704_v43 = vpop.permute.xlu1 %703 }
  0xba   : > { %v736_v60 = vsel %vm448_vm4, %v720_v37, %v704_v43  ;;  %v666_v44 = vpop.permute.xlu0 %665 }
  0xbb   : > { %1736 = vmatprep.mubr.msk.bf16.mxu1 %vm751_vm5, %v736_v60  ;;  %v722_v22 = vsel %vm431_vm3, %v2232_v26, %v666_v44 }
  0xbd   : > { %v1219_v16 = vpop.permute.xlu1 %1218 }
  0xbe   : > { %v1251_v45 = vsel %vm448_vm4, %v1235_v53, %v1219_v16  ;;  %v1181_v47 = vpop.permute.xlu0 %1180 }
  0xbf   : > { %1764 = vmatprep.mubr.msk.bf16.mxu0 %vm751_vm5, %v1251_v45  ;;  %v1237_v48 = vsel %vm431_vm3, %v2256_v51, %v1181_v47  ;;  %v2568_v47 = vld [vmem:[%s2671_s2] ss:$0 sm:$0xff] }
  0xc1   : > { %v1221_v49 = vpop.permute.xlu1 %1220 }
  0xc2   : > { %v1253_v50 = vsel %vm448_vm4, %v1237_v48, %v1221_v49  ;;  %v706_v52 = vpop.permute.xlu0 %705 }
  0xc3   : > { %v738_v25 = vsel %vm448_vm4, %v722_v22, %v706_v52  ;;  %1765 = vmatmul.mubr.msk.bf16.vlgmr.msra.gmra.mrb[0].mxu0 %vm751_vm5, %v1253_v50 }
  0xc4   : > { %1737 = vmatmul.mubr.msk.bf16.gmra.mrb[8].mxu1 %vm751_vm5, %v738_v25 }
  0xc5   : > { %v1183_v19 = vpop.permute.xlu1 %1182 }
  0xc6   : > { %v668_v54 = vpop.permute.xlu0 %667  ;;  %v1239_v26 = vsel %vm431_vm3, %v2269_v4, %v1183_v19 }
  0xc7   : > { %v724_v55 = vsel %vm431_vm3, %v2276_v14, %v668_v54 }
  0xc9   : > { %v708_v56 = vpop.permute.xlu1 %707 }
  0xca   : > { %v740_v51 = vsel %vm448_vm4, %v724_v55, %v708_v56  ;;  %v670_v57 = vpop.permute.xlu0 %669 }
  0xcb   : > { %1740 = vmatprep.mubr.msk.bf16.mxu1 %vm751_vm5, %v740_v51  ;;  %v726_v14 = vsel %vm431_vm3, %v2286_v21, %v670_v57 }
  0xcd   : > { %v1223_v61 = vpop.permute.xlu1 %1222 }
  0xce   : > { %v1255_v58 = vsel %vm448_vm4, %v1239_v26, %v1223_v61  ;;  %v1185_v62 = vpop.permute.xlu0 %1184 }
  0xcf   : > { %1768 = vmatprep.mubr.msk.bf16.mxu0 %vm751_vm5, %v1255_v58  ;;  %v1241_v63 = vsel %vm431_vm3, %v2308_v46, %v1185_v62 }
  0xd1   : > { %v1225_v3 = vpop.permute.xlu1 %1224 }
  0xd2   : > { %v1257_v5 = vsel %vm448_vm4, %v1241_v63, %v1225_v3  ;;  %v710_v8 = vpop.permute.xlu0 %709 }
  0xd3   : > { %v742_v9 = vsel %vm448_vm4, %v726_v14, %v710_v8  ;;  %1769 = vmatmul.mubr.msk.bf16.gmra.mrb[4].mxu0 %vm751_vm5, %v1257_v5 }
  0xd4   : > { %1741 = vmatmul.mubr.msk.bf16.gmra.mrb[12].mxu1 %vm751_vm5, %v742_v9 }
  0xd5   : > { %v1187_v4 = vpop.permute.xlu1 %1186 }
  0xd6   : > { %v383_v10 = vpop.permute.xlu0 %382  ;;  %v1243_v21 = vsel %vm431_vm3, %v2322_v1, %v1187_v4 }
  0xd7   : > { %v441_v12 = vsel %vm431_vm3, %v2328_v11, %v383_v10 }
  0xd9   : > { %v424_v2 = vpop.permute.xlu1 %423 }
  0xda   : > { %v458_v46 = vsel %vm448_vm4, %v441_v12, %v424_v2  ;;  %v385_v42 = vpop.permute.xlu0 %384 }
  0xdb   : > { %1754 = vmatprep.mubr.msk.bf16.mxu1 %vm751_vm5, %v458_v46  ;;  %v443_v11 = vsel %vm431_vm3, %v2342_v28, %v385_v42 }
  0xdd   : > { %v1227_v17 = vpop.permute.xlu1 %1226 }
  0xde   : > { %v1259_v6 = vsel %vm448_vm4, %v1243_v21, %v1227_v17  ;;  %v1189_v18 = vpop.permute.xlu0 %1188 }
  0xdf   : > { %1772 = vmatprep.mubr.msk.bf16.mxu0 %vm751_vm5, %v1259_v6  ;;  %v1245_v0 = vsel %vm431_vm3, %v2353_v39, %v1189_v18 }
  0xe1   : > { %v1229_v23 = vpop.permute.xlu1 %1228 }
  0xe2   : > { %v1261_v15 = vsel %vm448_vm4, %v1245_v0, %v1229_v23  ;;  %v426_v24 = vpop.permute.xlu0 %425 }
  0xe3   : > { %v460_v27 = vsel %vm448_vm4, %v443_v11, %v426_v24  ;;  %1773 = vmatmul.mubr.msk.bf16.gmra.mrb[8].mxu0 %vm751_vm5, %v1261_v15 }
  0xe4   : > { %1755 = vmatmul.mubr.msk.bf16.vlgmr.msra.gmra.mrb[8].mxu1 %vm751_vm5, %v460_v27 }
  0xe5   : > { %v1191_v1 = vpop.permute.xlu1 %1190 }
  0xe6   : > { %v387_v20 = vpop.permute.xlu0 %386  ;;  %v1247_v28 = vsel %vm431_vm3, %v2380_v7, %v1191_v1 }
  0xe7   : > { %v445_v32 = vsel %vm431_vm3, %v2388_v13, %v387_v20 }
  0xe9   : > { %v428_v33 = vpop.permute.xlu1 %427 }
  0xea   : > { %v462_v39 = vsel %vm448_vm4, %v445_v32, %v428_v33  ;;  %v389_v29 = vpop.permute.xlu0 %388 }
  0xeb   : > { %1758 = vmatprep.mubr.msk.bf16.mxu1 %vm751_vm5, %v462_v39  ;;  %v447_v38 = vsel %vm431_vm3, %v2413_v35, %v389_v29 }
  0xed   : > { %v1231_v30 = vpop.permute.xlu1 %1230 }
  0xee   : > { %v1263_v41 = vsel %vm448_vm4, %v1247_v28, %v1231_v30  ;;  %v1193_v34 = vpop.permute.xlu0 %1192 }
  0xef   : > { %1776 = vmatprep.mubr.msk.bf16.mxu0 %vm751_vm5, %v1263_v41  ;;  %v1249_v36 = vsel %vm431_vm3, %v2431_v59, %v1193_v34 }
  0xf1   : > { %v1233_v13 = vpop.permute.xlu1 %1232 }
  0xf2   : > { %v1265_v31 = vsel %vm448_vm4, %v1249_v36, %v1233_v13  ;;  %v430_v40 = vpop.permute.xlu0 %429 }
  0xf3   : > { %v464_v7 = vsel %vm448_vm4, %v447_v38, %v430_v40  ;;  %1777 = vmatmul.mubr.msk.bf16.gmra.mrb[12].mxu0 %vm751_vm5, %v1265_v31 }
  0xf4   : > { %1759 = vmatmul.mubr.msk.bf16.gmra.mrb[12].mxu1 %vm751_vm5, %v464_v7 }
 0x178   : > { %v1730_v37 = vpop.f32.mrb[0].mxu1 }
 0x179   : > { %v806_v43 = vpop.f32.mrb[1].mxu1 }
 0x17a   : > { %v1731_v60 = vpop.f32.mrb[2].mxu1 }
 0x17b   : > { %v809_v44 = vpop.f32.mrb[3].mxu1 }
 0x186   : > { %v1734_v59 = vpop.f32.mrb[4].mxu1 }
 0x187   : > { %v822_v53 = vpop.f32.mrb[5].mxu1 }
 0x188   : > { %v1735_v16 = vpop.f32.mrb[6].mxu1 }
 0x189   : > { %v825_v45 = vpop.f32.mrb[7].mxu1 }
 0x196   : > { %v1766_v35 = vpop.f32.mrb[0].mxu0 }
 0x197   : > { %v1782_v48 = vadd.f32 %v1766_v35, %v1730_v37  ;;  %v1327_v49 = vpop.f32.mrb[1].mxu0 }
 0x198   : > { %v1783_v22 = vadd.f32 %v1327_v49, %v806_v43  ;;  %v1767_v50 = vpop.f32.mrb[2].mxu0 }
 0x199   : > { %v1415_v52 = vadd.f32 %v1782_v48, %v2568_v47  ;;  %v1784_v25 = vadd.f32 %v1767_v50, %v1731_v60  ;;  %v1330_v19 = vpop.f32.mrb[3].mxu0 }
 0x19a   : > { %v1413_v54 = vadd.f32 %v1783_v22, %v2568_v47  ;;  %v1785_v55 = vadd.f32 %v1330_v19, %v809_v44 }
 0x19b   : > { %1431 = vst [vmem:[%s2572_s9 + $0x10] sm:$0xff] %v1415_v52  ;;  %v1416_v56 = vadd.f32 %v1784_v25, %v2568_v47 }
 0x19c   : > { %1429 = vst [vmem:[%s2572_s9] sm:$0xff] %v1413_v54  ;;  %v1414_v51 = vadd.f32 %v1785_v55, %v2568_v47 }
 0x19d   : > { %1432 = vst [vmem:[%s2572_s9 + $0x18] sm:$0xff] %v1416_v56 }
 0x19e   : > { %1430 = vst [vmem:[%s2572_s9 + $0x8] sm:$0xff] %v1414_v51 }
 0x1a6   : > { %v1770_v57 = vpop.f32.mrb[4].mxu0 }
 0x1a7   : > { %v1786_v26 = vadd.f32 %v1770_v57, %v1734_v59  ;;  %v1343_v61 = vpop.f32.mrb[5].mxu0 }
 0x1a8   : > { %v1787_v58 = vadd.f32 %v1343_v61, %v822_v53  ;;  %v1771_v62 = vpop.f32.mrb[6].mxu0 }
 0x1a9   : > { %v1419_v63 = vadd.f32 %v1786_v26, %v2568_v47  ;;  %v1788_v3 = vadd.f32 %v1771_v62, %v1735_v16  ;;  %v1346_v14 = vpop.f32.mrb[7].mxu0 }
 0x1aa   : > { %v1417_v5 = vadd.f32 %v1787_v58, %v2568_v47  ;;  %v1789_v8 = vadd.f32 %v1346_v14, %v825_v45 }
 0x1ab   : > { %1435 = vst [vmem:[%s2572_s9 + $0x30] sm:$0xff] %v1419_v63  ;;  %v1420_v9 = vadd.f32 %v1788_v3, %v2568_v47 }
 0x1ac   : > { %1433 = vst [vmem:[%s2572_s9 + $0x20] sm:$0xff] %v1417_v5  ;;  %v1418_v4 = vadd.f32 %v1789_v8, %v2568_v47 }
 0x1ad   : > { %1436 = vst [vmem:[%s2572_s9 + $0x38] sm:$0xff] %v1420_v9 }
 0x1ae   : > { %1434 = vst [vmem:[%s2572_s9 + $0x28] sm:$0xff] %v1418_v4 }
 0x1b6   : > { %v1774_v10 = vpop.f32.mrb[8].mxu0 }
 0x1b7   : > { %v1756_v12 = vpop.f32.mrb[8].mxu1  ;;  %v1359_v2 = vpop.f32.mrb[9].mxu0 }
 0x1b8   : > { %v1790_v46 = vadd.f32 %v1774_v10, %v1756_v12  ;;  %v959_v42 = vpop.f32.mrb[9].mxu1  ;;  %v1775_v21 = vpop.f32.mrb[10].mxu0 }
 0x1b9   : > { %v1791_v17 = vadd.f32 %v1359_v2, %v959_v42  ;;  %v1757_v6 = vpop.f32.mrb[10].mxu1  ;;  %v1362_v18 = vpop.f32.mrb[11].mxu0 }
 0x1ba   : > { %v1423_v0 = vadd.f32 %v1790_v46, %v2568_v47  ;;  %v1792_v23 = vadd.f32 %v1775_v21, %v1757_v6  ;;  %v962_v11 = vpop.f32.mrb[11].mxu1 }
 0x1bb   : > { %v1421_v15 = vadd.f32 %v1791_v17, %v2568_v47  ;;  %v1793_v24 = vadd.f32 %v1362_v18, %v962_v11 }
 0x1bc   : > { %1439 = vst [vmem:[%s2572_s9 + $0x50] sm:$0xff] %v1423_v0  ;;  %v1424_v27 = vadd.f32 %v1792_v23, %v2568_v47 }
 0x1bd   : > { %1437 = vst [vmem:[%s2572_s9 + $0x40] sm:$0xff] %v1421_v15  ;;  %v1422_v1 = vadd.f32 %v1793_v24, %v2568_v47 }
 0x1be   : > { %1440 = vst [vmem:[%s2572_s9 + $0x58] sm:$0xff] %v1424_v27 }
 0x1bf   : > { %1438 = vst [vmem:[%s2572_s9 + $0x48] sm:$0xff] %v1422_v1 }
 0x1c6   : > { %v1778_v20 = vpop.f32.mrb[12].mxu0 }
 0x1c7   : > { %v1760_v32 = vpop.f32.mrb[12].mxu1  ;;  %v1375_v33 = vpop.f32.mrb[13].mxu0 }
 0x1c8   : > { %v1794_v39 = vadd.f32 %v1778_v20, %v1760_v32  ;;  %v975_v29 = vpop.f32.mrb[13].mxu1  ;;  %v1779_v28 = vpop.f32.mrb[14].mxu0 }
 0x1c9   : > { %v1795_v30 = vadd.f32 %v1375_v33, %v975_v29  ;;  %v1761_v41 = vpop.f32.mrb[14].mxu1  ;;  %v1378_v34 = vpop.f32.mrb[15].mxu0 }
 0x1ca   : > { %v1427_v36 = vadd.f32 %v1794_v39, %v2568_v47  ;;  %v1796_v13 = vadd.f32 %v1779_v28, %v1761_v41  ;;  %v978_v38 = vpop.f32.mrb[15].mxu1 }
 0x1cb   : > { %v1425_v31 = vadd.f32 %v1795_v30, %v2568_v47  ;;  %v1797_v40 = vadd.f32 %v1378_v34, %v978_v38 }
 0x1cc   : > { %1443 = vst [vmem:[%s2572_s9 + $0x70] sm:$0xff] %v1427_v36  ;;  %v1428_v7 = vadd.f32 %v1796_v13, %v2568_v47 }
 0x1cd   : > { %1441 = vst [vmem:[%s2572_s9 + $0x60] sm:$0xff] %v1425_v31  ;;  %v1426_v37 = vadd.f32 %v1797_v40, %v2568_v47 }
 0x1ce   : > { %1444 = vst [vmem:[%s2572_s9 + $0x78] sm:$0xff] %v1428_v7 }
 0x1cf   : > { %1442 = vst [vmem:[%s2572_s9 + $0x68] sm:$0xff] %v1426_v37 }
 0x1d0   : > { %1957 = shalt.err (!%p1954_p6)
}
 0x1d1   : > { %s1958_s5 = scalar_lea.hbm %s2606_s28, 2048  ;;  %s1962_s20 = scalar_lea.hbm %s2672_s3, 8192 }
 0x1d2   : > { %p1959_p7 = scmp.ne.s32.totalorder %s2606_s28, %s1958_s5  ;;  %p1963_p11 = scmp.lt.u32.totalorder %s2606_s28, %s2672_s3 }
 0x1d3   : > { %p1964_p12 = scmp.lt.u32.totalorder %s1962_s20, %s1958_s5  ;;  %p1966_p0 = scmp.lt.u32.totalorder %s1958_s5, %s2606_s28 }
 0x1d4   : > { %p1960_p9 = pnand %p1959_p7, %p2115_p3 }
 0x1d5   : > { %p1965_p13 = por %p1964_p12, %p1963_p11 }
 0x1d6   : > { %p1961_p10 = pneg %p1960_p9 }
 0x1d7   : > { %p1967_p1 = por %p1966_p0, %p1965_p13 }
 0x1d9   : > { %p1968_p2 = pnand %p1967_p1, %p1961_p10 }
 0x1db   : > { %1971 = shalt.err (!%p1968_p2)
}
 0x1dc   : > { %s2043_s16 = smov 128  }
 0x1dd   : > { %1819 = dma.vmem_to_hbm [thread:$0]  (%p2115_p3), %s2610_s15, 2048, %s2606_s28, %s2616_s29, %s2043_s16, %s2043_s16, %s2040_s11  }
 0x1de PF: > { %p1825_p4 = scmp.ge.s32.totalorder %s2038_s19, 2  ;;  %s1477_s27 = sand.u32 1, %s2010_s12  }
 0x1df   : > { %s1478_s4 = scalar_lea.sflag [#allocation3], %s1477_s27 }
 0x1e0   : > { %p1822_p5 = pnand %p1825_p4, %p2124_p8 }
 0x1e2   : > { %2005 = dma.done.wait (!%p1822_p5), %s1478_s4, 2048  }
 0x1e3   : > { %2007 = vsyncadd (!%p1822_p5), %s1478_s4, 4294965248  ;;  %s16_s19 = sadd.s32 1, %s2038_s19   ;;  %s2675_s12 = smov %s2014_s13 }
 0x1e4   : > { %p13_p6 = scmp.ge.s32.totalorder %s16_s19, 6   ;;  %s2676_s13 = smov %s2018_s14 }
 0x1e5   : > { %s2677_s14 = smov %s2133_s30  ;;  %s2678_s15 = smov %s2030_s17 }
 0x1e6   : > { %s2679_s16 = smov %s2034_s18  ;;  %s2680_s17 = smov %s2683_s22 }
 0x1e7   : > { %s2681_s18 = smov %s2687_s23  ;;  %15 = sbr.rel (!%p13_p6) target bundleno = 5 (0x5), region = 72 }
 0x1ee   :  { %1483 = vsyncpa [#allocation3], 1 }
 0x1ef   :  { %1485 = vsyncpa [#allocation3 + $0x1], 1 }

</bundles_post_ra>
